<compile_context>
chip_gen: v5e
topology: v5e:2x2
jax: 0.10.0
libtpu: 0.0.40
codegen_flags: <defaults>
</compile_context>

<pallas_src>
import functools
import math

import jax
import jax.numpy as jnp
from jax import lax
from jax.experimental import pallas as pl
from jax.experimental.pallas import tpu as pltpu


def _attention_kernel(x_ref, wqkv_ref, bqkv_ref, wo_ref, bo_ref, *rest,
                      bn, seq_len, num_heads, head_dim, scale, has_mask):
    """Fused multi-head attention for a block of `bn` batch elements.

    x_ref    : (bn*L, C)  tokens (batch-major, flattened over batch & seq)
    wqkv_ref : (3C, C)    in_proj_weight
    bqkv_ref : (1, 3C)    in_proj_bias
    wo_ref   : (C, C)     out_proj.weight
    bo_ref   : (1, C)     out_proj.bias
    mask_ref : (L, L)     additive attention mask (only when has_mask)
    o_ref    : (bn*L, C)  output tokens
    """
    if has_mask:
        mask_ref, o_ref = rest
    else:
        (o_ref,) = rest

    L, H, D = seq_len, num_heads, head_dim
    C = H * D

    x = x_ref[...]                                        # (bn*L, C)

    # qkv = x @ W.T + b  (F.linear semantics): one MXU pass, M=bn*L, K=C, N=3C.
    qkv = lax.dot_general(
        x, wqkv_ref[...],
        dimension_numbers=(((1,), (1,)), ((), ())),
        preferred_element_type=jnp.float32,
    ) + bqkv_ref[0]                                       # (bn*L, 3C)
    qkv = qkv.reshape(bn, L, 3 * C)                       # cheap leading-dim split

    q = qkv[:, :, 0 * C:1 * C] * scale
    k = qkv[:, :, 1 * C:2 * C]
    v = qkv[:, :, 2 * C:3 * C]

    if has_mask:
        mask = mask_ref[...].astype(jnp.float32)          # hoisted out of head loop

    # Per-head attention, batched over the bn batch elements via dot_general
    # batch dims.  H is small (4-8) so the Python loop is fully unrolled.
    ctx_heads = []
    for h in range(H):
        sl = slice(h * D, (h + 1) * D)
        s = lax.dot_general(                              # (bn, L, L)
            q[:, :, sl], k[:, :, sl],
            dimension_numbers=(((2,), (2,)), ((0,), (0,))),
            preferred_element_type=jnp.float32,
        )
        if has_mask:
            s = s + mask                                  # broadcast over bn
        p = jax.nn.softmax(s, axis=-1)
        ctx_heads.append(lax.dot_general(                 # (bn, L, D)
            p, v[:, :, sl],
            dimension_numbers=(((2,), (1,)), ((0,), (0,))),
            preferred_element_type=jnp.float32,
        ))

    # Concatenate heads and apply ONE out-projection matmul (K = C).
    ctx = jnp.concatenate(ctx_heads, axis=-1).reshape(bn * L, C)
    out = lax.dot_general(
        ctx, wo_ref[...],
        dimension_numbers=(((1,), (1,)), ((), ())),
        preferred_element_type=jnp.float32,
    ) + bo_ref[0]                                         # (bn*L, C)

    o_ref[...] = out.astype(o_ref.dtype)


def attention_forward(x, params, attn_mask=None, *, num_heads, block_n=8):
    """x: (L, N, C) as in the PyTorch module. Returns (L, N, C)."""
    L, N, C = x.shape
    assert C % num_heads == 0
    head_dim = C // num_heads
    scale = head_dim ** (-0.5)

    wqkv = params["in_proj_weight"]                 # (3C, C)
    bqkv = params["in_proj_bias"].reshape(1, 3 * C)
    wo = params["out_proj_weight"]                  # (C, C)
    bo = params["out_proj_bias"].reshape(1, C)

    has_mask = attn_mask is not None
    if has_mask:
        # TODO(synk): only 2-D (L, L) masks supported; PyTorch also accepts
        # per-(batch*head) (N*H, L, L) masks.
        assert attn_mask.shape == (L, L)
        if attn_mask.dtype == jnp.bool_:
            attn_mask = jnp.where(attn_mask, jnp.float32(-jnp.inf),
                                  jnp.float32(0.0))
        else:
            attn_mask = attn_mask.astype(jnp.float32)

    # Fuse several batch elements per grid step to amortize per-step pipeline
    # overhead.  (Shrink block_n on v5e's smaller scoped VMEM; raise it and
    # vmem_limit_bytes for realistic L, C; on v7x shard the batch axis over
    # both TensorCores via CORE_PARALLEL.)
    bn = min(block_n, N)
    nb = pl.cdiv(N, bn)
    if nb > 1 and (bn * L) % 8 != 0:
        # Keep block row counts 8-sublane aligned when tiling; otherwise fall
        # back to a single block covering the whole (padded) batch.
        bn, nb = N, 1
    n_pad = nb * bn

    # (L, N, C) -> batch-major flat token slab (N*L, C).
    xt = jnp.transpose(x, (1, 0, 2)).reshape(N * L, C)
    if n_pad != N:
        xt = jnp.concatenate(
            [xt, jnp.zeros(((n_pad - N) * L, C), xt.dtype)], axis=0)

    kernel = functools.partial(
        _attention_kernel, bn=bn, seq_len=L, num_heads=num_heads,
        head_dim=head_dim, scale=scale, has_mask=has_mask)

    in_specs = [
        pl.BlockSpec((bn * L, C), lambda n: (n, 0)),       # x tokens
        pl.BlockSpec((3 * C, C), lambda n: (0, 0)),        # in_proj_weight
        pl.BlockSpec((1, 3 * C), lambda n: (0, 0)),        # in_proj_bias
        pl.BlockSpec((C, C), lambda n: (0, 0)),            # out_proj.weight
        pl.BlockSpec((1, C), lambda n: (0, 0)),            # out_proj.bias
    ]
    args = [xt, wqkv, bqkv, wo, bo]
    if has_mask:
        in_specs.append(pl.BlockSpec((L, L), lambda n: (0, 0)))
        args.append(attn_mask)

    out = pl.pallas_call(
        kernel,
        out_shape=jax.ShapeDtypeStruct((n_pad * L, C), x.dtype),
        grid=(nb,),
        in_specs=in_specs,
        out_specs=pl.BlockSpec((bn * L, C), lambda n: (n, 0)),
        compiler_params=pltpu.CompilerParams(
            dimension_semantics=("parallel",)),
    )(*args)

    out = out.reshape(n_pad, L, C)[:N]
    return jnp.transpose(out, (1, 0, 2))                   # back to (L, N, C)


def attention_reference(x, params, attn_mask, *, num_heads):
    """Pure-JAX replica of the PyTorch forward for verification."""
    L, N, C = x.shape
    D = C // num_heads
    scale = D ** (-0.5)
    qkv = jnp.einsum("lnc,oc->lno", x, params["in_proj_weight"]) + params["in_proj_bias"]
    q, k, v = jnp.split(qkv, 3, axis=-1)

    def to_heads(t):
        return jnp.transpose(t.reshape(L, N * num_heads, D), (1, 0, 2))

    q = to_heads(q) * scale
    k = to_heads(k)
    v = to_heads(v)
    attn = jnp.einsum("bld,bmd->blm", q, k)
    if attn_mask is not None:
        attn = attn + attn_mask
    attn = jax.nn.softmax(attn, axis=-1)
    o = jnp.einsum("blm,bmd->bld", attn, v)
    o = jnp.transpose(o, (1, 0, 2)).reshape(L, N, C)
    return jnp.einsum("lnc,oc->lno", o, params["out_proj_weight"]) + params["out_proj_bias"]


if __name__ == "__main__":
    # Small shapes consistent with the module: seq L=8, batch N=2, dim C=32.
    L, N, C = 8, 2, 32
    num_heads = 4
    head_dim = C // num_heads
    scale = head_dim ** (-0.5)

    key = jax.random.PRNGKey(0)
    k_x, k_w, k_wo, k_bo = jax.random.split(key, 4)

    # Deterministic parameter init mirroring __init__ shapes.
    params = {
        "in_proj_weight": jax.random.normal(k_w, (3 * C, C), jnp.float32) * scale,
        "in_proj_bias": jnp.zeros((3 * C,), jnp.float32),
        # nn.Linear default: uniform(-1/sqrt(C), 1/sqrt(C))
        "out_proj_weight": jax.random.uniform(
            k_wo, (C, C), jnp.float32, -1.0 / math.sqrt(C), 1.0 / math.sqrt(C)),
        "out_proj_bias": jax.random.uniform(
            k_bo, (C,), jnp.float32, -1.0 / math.sqrt(C), 1.0 / math.sqrt(C)),
    }

    x = jax.random.normal(k_x, (L, N, C), jnp.float32)

    # Path 1: no attention mask (mask input specialized away).
    out = jax.block_until_ready(
        attention_forward(x, params, attn_mask=None, num_heads=num_heads))
    ref = attention_reference(x, params, None, num_heads=num_heads)
    assert out.shape == (L, N, C)
    assert jnp.allclose(out, ref, atol=1e-4, rtol=1e-4), (
        f"no-mask max abs err {jnp.max(jnp.abs(out - ref))}")

    # Path 2: additive causal mask (exercises the mask-specialized kernel).
    causal = jnp.where(jnp.triu(jnp.ones((L, L), jnp.bool_), k=1),
                       jnp.float32(-jnp.inf), jnp.float32(0.0))
    out_m = jax.block_until_ready(
        attention_forward(x, params, attn_mask=causal, num_heads=num_heads))
    ref_m = attention_reference(x, params, causal, num_heads=num_heads)
    assert jnp.allclose(out_m, ref_m, atol=1e-4, rtol=1e-4), (
        f"masked max abs err {jnp.max(jnp.abs(out_m - ref_m))}")

    print("KERNEL_OK")
</pallas_src>

<mosaic_0001>
module attributes {stable_mosaic.version = 11 : i64} {
  func.func @_attention_kernel(%arg0: i32, %arg1: memref<16x32xf32, #tpu.memory_space<vmem>>, %arg2: memref<96x32xf32, #tpu.memory_space<vmem>>, %arg3: memref<1x96xf32, #tpu.memory_space<vmem>>, %arg4: memref<32x32xf32, #tpu.memory_space<vmem>>, %arg5: memref<1x32xf32, #tpu.memory_space<vmem>>, %arg6: memref<16x32xf32, #tpu.memory_space<vmem>>) attributes {dimension_semantics = [#tpu.dimension_semantics<parallel>], iteration_bounds = array<i64: 1>, scalar_prefetch = 0 : i64, scratch_operands = 0 : i64, tpu.core_type = #tpu.core_type<tc>, window_params = [{transform_indices = @transform_0, window_bounds = array<i64: 16, 32>}, {pipeline_mode = #tpu.pipeline_mode<synchronous>, transform_indices = @transform_1, window_bounds = array<i64: 96, 32>}, {pipeline_mode = #tpu.pipeline_mode<synchronous>, transform_indices = @transform_2, window_bounds = array<i64: 1, 96>}, {pipeline_mode = #tpu.pipeline_mode<synchronous>, transform_indices = @transform_3, window_bounds = array<i64: 32, 32>}, {pipeline_mode = #tpu.pipeline_mode<synchronous>, transform_indices = @transform_4, window_bounds = array<i64: 1, 32>}, {transform_indices = @transform_5, window_bounds = array<i64: 16, 32>}]} {
    %c0 = arith.constant 0 : index
    %c0_0 = arith.constant 0 : index
    %0 = vector.load %arg1[%c0, %c0_0] : memref<16x32xf32, #tpu.memory_space<vmem>>, vector<16x32xf32>
    %c0_1 = arith.constant 0 : index
    %c0_2 = arith.constant 0 : index
    %1 = vector.load %arg2[%c0_1, %c0_2] : memref<96x32xf32, #tpu.memory_space<vmem>>, vector<96x32xf32>
    %cst = arith.constant dense<0.000000e+00> : vector<16x96xf32>
    %2 = tpu.matmul %0, %1, %cst {dimension_numbers = #tpu.dot_dimension_numbers<[1], [1], [0], [0], [0, 0, 1, 0], [], []>} : vector<16x32xf32>, vector<96x32xf32>, vector<16x96xf32> -> vector<16x96xf32>
    %c0_3 = arith.constant 0 : index
    %c0_4 = arith.constant 0 : index
    %3 = vector.load %arg3[%c0_3, %c0_4] : memref<1x96xf32, #tpu.memory_space<vmem>>, vector<1x96xf32>
    %4 = vector.shape_cast %3 : vector<1x96xf32> to vector<96xf32>
    %5 = vector.shape_cast %4 : vector<96xf32> to vector<1x96xf32>
    %6 = vector.broadcast %5 : vector<1x96xf32> to vector<16x96xf32>
    %7 = arith.addf %2, %6 : vector<16x96xf32>
    %8 = vector.shape_cast %7 : vector<16x96xf32> to vector<2x8x96xf32>
    %9 = vector.extract_strided_slice %8 {offsets = [0, 0, 0], sizes = [2, 8, 32], strides = [1, 1, 1]} : vector<2x8x96xf32> to vector<2x8x32xf32>
    %cst_5 = arith.constant 0.353553385 : f32
    %10 = vector.broadcast %cst_5 : f32 to vector<2x8x32xf32>
    %11 = arith.mulf %9, %10 : vector<2x8x32xf32>
    %12 = vector.extract_strided_slice %8 {offsets = [0, 0, 32], sizes = [2, 8, 32], strides = [1, 1, 1]} : vector<2x8x96xf32> to vector<2x8x32xf32>
    %13 = vector.extract_strided_slice %8 {offsets = [0, 0, 64], sizes = [2, 8, 32], strides = [1, 1, 1]} : vector<2x8x96xf32> to vector<2x8x32xf32>
    %14 = vector.extract_strided_slice %11 {offsets = [0, 0, 0], sizes = [2, 8, 8], strides = [1, 1, 1]} : vector<2x8x32xf32> to vector<2x8x8xf32>
    %15 = vector.extract_strided_slice %12 {offsets = [0, 0, 0], sizes = [2, 8, 8], strides = [1, 1, 1]} : vector<2x8x32xf32> to vector<2x8x8xf32>
    %cst_6 = arith.constant dense<0.000000e+00> : vector<2x8x8xf32>
    %16 = tpu.matmul %14, %15, %cst_6 {dimension_numbers = #tpu.dot_dimension_numbers<[2], [2], [1], [1], [0, 0, 0, 1, 1, 1], [0], [0]>} : vector<2x8x8xf32>, vector<2x8x8xf32>, vector<2x8x8xf32> -> vector<2x8x8xf32>
    %cst_7 = arith.constant dense<0xFF800000> : vector<2x8xf32>
    %17 = vector.multi_reduction <maximumf>, %16, %cst_7 [2] : vector<2x8x8xf32> to vector<2x8xf32>
    %cst_8 = arith.constant 0xFF800000 : f32
    %18 = vector.broadcast %cst_8 : f32 to vector<2x8xf32>
    %19 = arith.maximumf %18, %17 : vector<2x8xf32>
    %20 = vector.shape_cast %19 : vector<2x8xf32> to vector<2x8x1xf32>
    %21 = vector.broadcast %20 : vector<2x8x1xf32> to vector<2x8x8xf32>
    %22 = arith.subf %16, %21 : vector<2x8x8xf32>
    %23 = math.exp %22 : vector<2x8x8xf32>
    %cst_9 = arith.constant dense<0.000000e+00> : vector<2x8xf32>
    %24 = vector.multi_reduction <add>, %23, %cst_9 [2] : vector<2x8x8xf32> to vector<2x8xf32>
    %25 = vector.shape_cast %24 : vector<2x8xf32> to vector<2x8x1xf32>
    %26 = vector.broadcast %25 : vector<2x8x1xf32> to vector<2x8x8xf32>
    %27 = arith.divf %23, %26 : vector<2x8x8xf32>
    %28 = vector.extract_strided_slice %13 {offsets = [0, 0, 0], sizes = [2, 8, 8], strides = [1, 1, 1]} : vector<2x8x32xf32> to vector<2x8x8xf32>
    %cst_10 = arith.constant dense<0.000000e+00> : vector<2x8x8xf32>
    %29 = tpu.matmul %27, %28, %cst_10 {dimension_numbers = #tpu.dot_dimension_numbers<[2], [1], [1], [2], [0, 0, 0, 1, 1, 2], [0], [0]>} : vector<2x8x8xf32>, vector<2x8x8xf32>, vector<2x8x8xf32> -> vector<2x8x8xf32>
    %30 = vector.extract_strided_slice %11 {offsets = [0, 0, 8], sizes = [2, 8, 8], strides = [1, 1, 1]} : vector<2x8x32xf32> to vector<2x8x8xf32>
    %31 = vector.extract_strided_slice %12 {offsets = [0, 0, 8], sizes = [2, 8, 8], strides = [1, 1, 1]} : vector<2x8x32xf32> to vector<2x8x8xf32>
    %cst_11 = arith.constant dense<0.000000e+00> : vector<2x8x8xf32>
    %32 = tpu.matmul %30, %31, %cst_11 {dimension_numbers = #tpu.dot_dimension_numbers<[2], [2], [1], [1], [0, 0, 0, 1, 1, 1], [0], [0]>} : vector<2x8x8xf32>, vector<2x8x8xf32>, vector<2x8x8xf32> -> vector<2x8x8xf32>
    %cst_12 = arith.constant dense<0xFF800000> : vector<2x8xf32>
    %33 = vector.multi_reduction <maximumf>, %32, %cst_12 [2] : vector<2x8x8xf32> to vector<2x8xf32>
    %cst_13 = arith.constant 0xFF800000 : f32
    %34 = vector.broadcast %cst_13 : f32 to vector<2x8xf32>
    %35 = arith.maximumf %34, %33 : vector<2x8xf32>
    %36 = vector.shape_cast %35 : vector<2x8xf32> to vector<2x8x1xf32>
    %37 = vector.broadcast %36 : vector<2x8x1xf32> to vector<2x8x8xf32>
    %38 = arith.subf %32, %37 : vector<2x8x8xf32>
    %39 = math.exp %38 : vector<2x8x8xf32>
    %cst_14 = arith.constant dense<0.000000e+00> : vector<2x8xf32>
    %40 = vector.multi_reduction <add>, %39, %cst_14 [2] : vector<2x8x8xf32> to vector<2x8xf32>
    %41 = vector.shape_cast %40 : vector<2x8xf32> to vector<2x8x1xf32>
    %42 = vector.broadcast %41 : vector<2x8x1xf32> to vector<2x8x8xf32>
    %43 = arith.divf %39, %42 : vector<2x8x8xf32>
    %44 = vector.extract_strided_slice %13 {offsets = [0, 0, 8], sizes = [2, 8, 8], strides = [1, 1, 1]} : vector<2x8x32xf32> to vector<2x8x8xf32>
    %cst_15 = arith.constant dense<0.000000e+00> : vector<2x8x8xf32>
    %45 = tpu.matmul %43, %44, %cst_15 {dimension_numbers = #tpu.dot_dimension_numbers<[2], [1], [1], [2], [0, 0, 0, 1, 1, 2], [0], [0]>} : vector<2x8x8xf32>, vector<2x8x8xf32>, vector<2x8x8xf32> -> vector<2x8x8xf32>
    %46 = vector.extract_strided_slice %11 {offsets = [0, 0, 16], sizes = [2, 8, 8], strides = [1, 1, 1]} : vector<2x8x32xf32> to vector<2x8x8xf32>
    %47 = vector.extract_strided_slice %12 {offsets = [0, 0, 16], sizes = [2, 8, 8], strides = [1, 1, 1]} : vector<2x8x32xf32> to vector<2x8x8xf32>
    %cst_16 = arith.constant dense<0.000000e+00> : vector<2x8x8xf32>
    %48 = tpu.matmul %46, %47, %cst_16 {dimension_numbers = #tpu.dot_dimension_numbers<[2], [2], [1], [1], [0, 0, 0, 1, 1, 1], [0], [0]>} : vector<2x8x8xf32>, vector<2x8x8xf32>, vector<2x8x8xf32> -> vector<2x8x8xf32>
    %cst_17 = arith.constant dense<0xFF800000> : vector<2x8xf32>
    %49 = vector.multi_reduction <maximumf>, %48, %cst_17 [2] : vector<2x8x8xf32> to vector<2x8xf32>
    %cst_18 = arith.constant 0xFF800000 : f32
    %50 = vector.broadcast %cst_18 : f32 to vector<2x8xf32>
    %51 = arith.maximumf %50, %49 : vector<2x8xf32>
    %52 = vector.shape_cast %51 : vector<2x8xf32> to vector<2x8x1xf32>
    %53 = vector.broadcast %52 : vector<2x8x1xf32> to vector<2x8x8xf32>
    %54 = arith.subf %48, %53 : vector<2x8x8xf32>
    %55 = math.exp %54 : vector<2x8x8xf32>
    %cst_19 = arith.constant dense<0.000000e+00> : vector<2x8xf32>
    %56 = vector.multi_reduction <add>, %55, %cst_19 [2] : vector<2x8x8xf32> to vector<2x8xf32>
    %57 = vector.shape_cast %56 : vector<2x8xf32> to vector<2x8x1xf32>
    %58 = vector.broadcast %57 : vector<2x8x1xf32> to vector<2x8x8xf32>
    %59 = arith.divf %55, %58 : vector<2x8x8xf32>
    %60 = vector.extract_strided_slice %13 {offsets = [0, 0, 16], sizes = [2, 8, 8], strides = [1, 1, 1]} : vector<2x8x32xf32> to vector<2x8x8xf32>
    %cst_20 = arith.constant dense<0.000000e+00> : vector<2x8x8xf32>
    %61 = tpu.matmul %59, %60, %cst_20 {dimension_numbers = #tpu.dot_dimension_numbers<[2], [1], [1], [2], [0, 0, 0, 1, 1, 2], [0], [0]>} : vector<2x8x8xf32>, vector<2x8x8xf32>, vector<2x8x8xf32> -> vector<2x8x8xf32>
    %62 = vector.extract_strided_slice %11 {offsets = [0, 0, 24], sizes = [2, 8, 8], strides = [1, 1, 1]} : vector<2x8x32xf32> to vector<2x8x8xf32>
    %63 = vector.extract_strided_slice %12 {offsets = [0, 0, 24], sizes = [2, 8, 8], strides = [1, 1, 1]} : vector<2x8x32xf32> to vector<2x8x8xf32>
    %cst_21 = arith.constant dense<0.000000e+00> : vector<2x8x8xf32>
    %64 = tpu.matmul %62, %63, %cst_21 {dimension_numbers = #tpu.dot_dimension_numbers<[2], [2], [1], [1], [0, 0, 0, 1, 1, 1], [0], [0]>} : vector<2x8x8xf32>, vector<2x8x8xf32>, vector<2x8x8xf32> -> vector<2x8x8xf32>
    %cst_22 = arith.constant dense<0xFF800000> : vector<2x8xf32>
    %65 = vector.multi_reduction <maximumf>, %64, %cst_22 [2] : vector<2x8x8xf32> to vector<2x8xf32>
    %cst_23 = arith.constant 0xFF800000 : f32
    %66 = vector.broadcast %cst_23 : f32 to vector<2x8xf32>
    %67 = arith.maximumf %66, %65 : vector<2x8xf32>
    %68 = vector.shape_cast %67 : vector<2x8xf32> to vector<2x8x1xf32>
    %69 = vector.broadcast %68 : vector<2x8x1xf32> to vector<2x8x8xf32>
    %70 = arith.subf %64, %69 : vector<2x8x8xf32>
    %71 = math.exp %70 : vector<2x8x8xf32>
    %cst_24 = arith.constant dense<0.000000e+00> : vector<2x8xf32>
    %72 = vector.multi_reduction <add>, %71, %cst_24 [2] : vector<2x8x8xf32> to vector<2x8xf32>
    %73 = vector.shape_cast %72 : vector<2x8xf32> to vector<2x8x1xf32>
    %74 = vector.broadcast %73 : vector<2x8x1xf32> to vector<2x8x8xf32>
    %75 = arith.divf %71, %74 : vector<2x8x8xf32>
    %76 = vector.extract_strided_slice %13 {offsets = [0, 0, 24], sizes = [2, 8, 8], strides = [1, 1, 1]} : vector<2x8x32xf32> to vector<2x8x8xf32>
    %cst_25 = arith.constant dense<0.000000e+00> : vector<2x8x8xf32>
    %77 = tpu.matmul %75, %76, %cst_25 {dimension_numbers = #tpu.dot_dimension_numbers<[2], [1], [1], [2], [0, 0, 0, 1, 1, 2], [0], [0]>} : vector<2x8x8xf32>, vector<2x8x8xf32>, vector<2x8x8xf32> -> vector<2x8x8xf32>
    %78 = tpu.concatenate %29, %45, %61, %77 in 2 : vector<2x8x8xf32>, vector<2x8x8xf32>, vector<2x8x8xf32>, vector<2x8x8xf32> -> vector<2x8x32xf32>
    %79 = vector.shape_cast %78 : vector<2x8x32xf32> to vector<16x32xf32>
    %c0_26 = arith.constant 0 : index
    %c0_27 = arith.constant 0 : index
    %80 = vector.load %arg4[%c0_26, %c0_27] : memref<32x32xf32, #tpu.memory_space<vmem>>, vector<32x32xf32>
    %cst_28 = arith.constant dense<0.000000e+00> : vector<16x32xf32>
    %81 = tpu.matmul %79, %80, %cst_28 {dimension_numbers = #tpu.dot_dimension_numbers<[1], [1], [0], [0], [0, 0, 1, 0], [], []>} : vector<16x32xf32>, vector<32x32xf32>, vector<16x32xf32> -> vector<16x32xf32>
    %c0_29 = arith.constant 0 : index
    %c0_30 = arith.constant 0 : index
    %82 = vector.load %arg5[%c0_29, %c0_30] : memref<1x32xf32, #tpu.memory_space<vmem>>, vector<1x32xf32>
    %83 = vector.shape_cast %82 : vector<1x32xf32> to vector<32xf32>
    %84 = vector.shape_cast %83 : vector<32xf32> to vector<1x32xf32>
    %85 = vector.broadcast %84 : vector<1x32xf32> to vector<16x32xf32>
    %86 = arith.addf %81, %85 : vector<16x32xf32>
    %c0_31 = arith.constant 0 : index
    %c0_32 = arith.constant 0 : index
    %87 = vector.load %arg6[%c0_31, %c0_32] : memref<16x32xf32, #tpu.memory_space<vmem>>, vector<16x32xf32>
    tpu.vector_store %arg6[%c0_31, %c0_32], %86 {strides = array<i32>} : memref<16x32xf32, #tpu.memory_space<vmem>>, vector<16x32xf32>,
    return
  }
  func.func @transform_0(%arg0: i32) -> (i32, i32) {
    %c0_i32 = arith.constant 0 : i32
    %c0_i32_0 = arith.constant 0 : i32
    return %arg0, %c0_i32 : i32, i32
  }
  func.func @transform_1(%arg0: i32) -> (i32, i32) {
    %c0_i32 = arith.constant 0 : i32
    %c0_i32_0 = arith.constant 0 : i32
    %c0_i32_1 = arith.constant 0 : i32
    return %c0_i32, %c0_i32_0 : i32, i32
  }
  func.func @transform_2(%arg0: i32) -> (i32, i32) {
    %c0_i32 = arith.constant 0 : i32
    %c0_i32_0 = arith.constant 0 : i32
    %c0_i32_1 = arith.constant 0 : i32
    return %c0_i32, %c0_i32_0 : i32, i32
  }
  func.func @transform_3(%arg0: i32) -> (i32, i32) {
    %c0_i32 = arith.constant 0 : i32
    %c0_i32_0 = arith.constant 0 : i32
    %c0_i32_1 = arith.constant 0 : i32
    return %c0_i32, %c0_i32_0 : i32, i32
  }
  func.func @transform_4(%arg0: i32) -> (i32, i32) {
    %c0_i32 = arith.constant 0 : i32
    %c0_i32_0 = arith.constant 0 : i32
    %c0_i32_1 = arith.constant 0 : i32
    return %c0_i32, %c0_i32_0 : i32, i32
  }
  func.func @transform_5(%arg0: i32) -> (i32, i32) {
    %c0_i32 = arith.constant 0 : i32
    %c0_i32_0 = arith.constant 0 : i32
    return %arg0, %c0_i32 : i32, i32
  }
}

</mosaic_0001>

<bundles_post_ra>
// kernel: tpu_custom_call.1
= control target key start
LH: loop header
LB: loop body
LE: loop exit
PB: predicated region body
PF: predicated region fallthrough
CT: control target
= control target key end

     0   :  { %vm39_vm0 = vcmask 261120   ;;  %s1237_s0 = inlined_call_operand.vmem [shape: f32[16,32], index: 0, kind: input, shape index: {}]   ;;  %s1238_s1 = inlined_call_operand.vmem [shape: f32[96,32], index: 1, kind: input, shape index: {}]   ;;  %s1239_s2 = inlined_call_operand.vmem [shape: f32[1,96], index: 2, kind: input, shape index: {}]   ;;  %s1240_s3 = inlined_call_operand.vmem [shape: f32[32,32], index: 3, kind: input, shape index: {}]   ;;  %s1241_s4 = inlined_call_operand.vmem [shape: f32[1,32], index: 4, kind: input, shape index: {}]   ;;  %s1242_s5 = inlined_call_operand.hbm [shape: f32[16,32], index: 5, kind: output, shape index: {}]  }
   0x1   :  { %v34_v0 = vld [vmem:[%s1238_s1 + $0x58] sm:$0xff]  ;;  %v33_v1 = vld [vmem:[%s1238_s1 + $0x50] sm:$0xff] }
   0x2   :  { %833 = vmatpush.xpose.msk.msra.mxu0 %vm39_vm0, %v34_v0 }
   0x3   :  { %10 = vsyncpa [#allocation3], 0  ;;  %v32_v2 = vld [vmem:[%s1238_s1 + $0x48] sm:$0xff]  ;;  %v31_v3 = vld [vmem:[%s1238_s1 + $0x40] sm:$0xff]  ;;  %s959_s23 = smov 96   ;;  %s962_s24 = smov 112  }
   0x4   :  { %v30_v4 = vld [vmem:[%s1238_s1 + $0x38] sm:$0xff]  ;;  %v29_v5 = vld [vmem:[%s1238_s1 + $0x30] sm:$0xff]  ;;  %v28_v6 = vld [vmem:[%s1238_s1 + $0x28] sm:$0xff]  ;;  %vm110_vm1 = vcmask 64512   ;;  %s963_s25 = smov 64   ;;  %s964_s26 = smov 56  }
   0x5   :  { %v27_v7 = vld [vmem:[%s1238_s1 + $0x20] sm:$0xff]  ;;  %v26_v8 = vld [vmem:[%s1238_s1 + $0x18] sm:$0xff]  ;;  %v25_v9 = vld [vmem:[%s1238_s1 + $0x10] sm:$0xff]  ;;  %s965_s27 = smov 72   ;;  %s966_s28 = smov 48  }
   0x6   :  { %834 = vmatpush.xpose.msk.msra.mxu0 %vm39_vm0, %v33_v1  ;;  %v24_v10 = vld [vmem:[%s1238_s1 + $0x8] sm:$0xff]  ;;  %v23_v11 = vld [vmem:[%s1238_s1] sm:$0xff]  ;;  %s958_s1 = smov 88   ;;  %s967_s29 = smov 104  }
   0x7   :  { %v21_v12 = vld [vmem:[%s1237_s0] sm:$0xff]  ;;  %v22_v13 = vld [vmem:[%s1237_s0 + $0x8] sm:$0xff]  ;;  %s960_s0 = smov 120   ;;  %s968_s30 = smov 40  }
   0x8   :  { %v898_v14 = vld [vmem:[%s1239_s2] ss:$0 sm:$0xff]  ;;  %s961_s2 = smov 80   ;;  %s969_s6 = smov 16  }
   0x9   :  { %s970_s7 = smov 8   ;;  %s971_s8 = smov 24  }
   0xa   :  { %835 = vmatpush.xpose.msk.msra.mxu0 %vm39_vm0, %v32_v2  ;;  %s972_s18 = smov [#allocation2]   ;;  %s821_s22 = sshll.u32 %s1242_s5, 4  ;;  %s822_s22 = int_to_ptr.hbm [resolvable:$true] %s821_s22 }
   0xb   :  { %s819_s19 = sshll.u32 %s972_s18, 4  ;;  %s820_s19 = int_to_ptr.vmem [resolvable:$true] %s819_s19 }
   0xe   :  { %836 = vmatpush.xpose.msk.msra.mxu0 %vm39_vm0, %v31_v3 }
  0x12   :  { %837 = vmatpush.xpose.msk.msra.mxu0 %vm39_vm0, %v30_v4 }
  0x16   :  { %838 = vmatpush.xpose.msk.msra.mxu0 %vm39_vm0, %v29_v5 }
  0x1a   :  { %839 = vmatpush.xpose.msk.msra.mxu0 %vm39_vm0, %v28_v6 }
  0x1e   :  { %840 = vmatpush.xpose.msk.msra.mxu0 %vm39_vm0, %v27_v7 }
  0x22   :  { %841 = vmatpush.xpose.msk.msra.mxu0 %vm39_vm0, %v26_v8 }
  0x26   :  { %842 = vmatpush.xpose.msk.msra.mxu0 %vm39_vm0, %v25_v9 }
  0x2a   :  { %843 = vmatpush.xpose.msk.msra.mxu0 %vm39_vm0, %v24_v10 }
  0x2e   :  { %844 = vmatpush.xpose.msk.msra.mxu0 %vm39_vm0, %v23_v11 }
  0x31   :  { %845 = vmatmul.msk.f32.vlgmr.msra.gmra.mxu0 %vm39_vm0, %v21_v12 }
  0x39   :  { %846 = vmatmul.msk.f32.gmra.mxu0 %vm39_vm0, %v22_v13 }
  0xae   :  { %v99_v15 = vpop.f32.mrf.mxu0 }
  0xaf   :  { %v1063_v16 = vadd.f32 %v898_v14, %v99_v15 }
  0xb1   :  { %266 = vrot.lane.b32.xlu1 %v1063_v16, %s958_s1  ;;  %108 = vrot.lane.b32.xlu0 %v1063_v16, %s959_s23  ;;  %v1070_v19 = vmul.f32 0.35355338, %v1063_v16 }
  0xb6   :  { %v102_v17 = vpop.f32.mrf.mxu0 }
  0xb7   :  { %v1067_v18 = vadd.f32 %v898_v14, %v102_v17 }
  0xb9   :  { %294 = vrot.lane.b32.xlu2 %v1067_v18, %s958_s1  ;;  %137 = vrot.lane.b32.xlu0 %v1067_v18, %s959_s23  ;;  %v1076_v20 = vmul.f32 0.35355338, %v1067_v18  ;;  %v893_v39 = vpack.i.bf16 %v1067_v18, %v1063_v16  ;;  %s973_s1 = smov 128  }
  0xba   :  { %264 = vrot.lane.b32.xlu1 %v1070_v19, %s960_s0 }
  0xc1   :  { %292 = vrot.lane.b32.xlu2 %v1076_v20, %s960_s0  ;;  %422 = vrot.lane.b32.xlu0 %v1063_v16, %s961_s2 }
  0xc2   :  { %420 = vrot.lane.b32.xlu1 %v1070_v19, %s962_s24 }
 0x113   :  { %v295_v24 = vpop.permute.xlu2 %294 }
 0x11b   :  { %v293_v27 = vpop.permute.xlu2 %292 }
 0x123   :  { %v267_v21 = vpop.permute.xlu1 %266  ;;  %v109_v22 = vpop.permute.xlu0 %108 }
 0x124   :  { %847 = vmatpush.xpose.msk.msra.mxu2 %vm110_vm1, %v109_v22  ;;  %853 = vmatpush.xpose.msk.msra.mxu1 %vm110_vm1, %v267_v21 }
 0x127   :  { %848 = vmatmul.msk.f32.vlgmr.msra.gmra.mxu2 %vm110_vm1, %v1070_v19 }
 0x12b   :  { %v138_v23 = vpop.permute.xlu0 %137 }
 0x12c   :  { %v265_v25 = vpop.permute.xlu1 %264  ;;  %849 = vmatpush.xpose.msk.msrb.mxu2 %vm110_vm1, %v138_v23 }
 0x12d   :  { %854 = vmatmul.msk.f32.vlgmr.msra.gmra.mxu1 %vm110_vm1, %v265_v25 }
 0x12f   :  { %850 = vmatmul.msk.f32.vlgmr.msrb.gmra.mxu2 %vm110_vm1, %v1076_v20 }
 0x130   :  { %855 = vmatpush.xpose.msk.msra.mxu2 %vm110_vm1, %v295_v24 }
 0x133   :  { %v423_v26 = vpop.permute.xlu0 %422 }
 0x134   :  { %859 = vmatpush.xpose.msk.msrb.mxu2 %vm110_vm1, %v423_v26  ;;  %v421_v28 = vpop.permute.xlu1 %420 }
 0x137   :  { %856 = vmatmul.msk.f32.vlgmr.msra.gmra.mxu2 %vm110_vm1, %v293_v27 }
 0x13f   :  { %860 = vmatmul.msk.f32.vlgmr.msrb.gmra.mxu2 %vm110_vm1, %v421_v28 }
 0x1aa   :  { %v289_v29 = vpop.f32.mrf.mxu1  ;;  %v133_v30 = vpop.f32.mrf.mxu2 }
 0x1ab   :  { %v320_v31 = vsel %vm110_vm1, %v289_v29, -inf  ;;  %v164_v32 = vsel %vm110_vm1, %v133_v30, -inf }
 0x1ac   :  { %321 = vmax.xlane.f32.xlu1 %v320_v31  ;;  %165 = vmax.xlane.f32.xlu2 %v164_v32 }
 0x1b2   :  { %v161_v33 = vpop.f32.mrf.mxu2 }
 0x1b3   :  { %v167_v34 = vsel %vm110_vm1, %v161_v33, -inf }
 0x1b4   :  { %168 = vmax.xlane.f32.xlu0 %v167_v34 }
 0x1ba   :  { %v317_v35 = vpop.f32.mrf.mxu2 }
 0x1bb   :  { %v323_v36 = vsel %vm110_vm1, %v317_v35, -inf }
 0x1bc   :  { %324 = vmax.xlane.f32.xlu2 %v323_v36 }
 0x1c2   :  { %v445_v37 = vpop.f32.mrf.mxu2 }
 0x1c3   :  { %v476_v38 = vsel %vm110_vm1, %v445_v37, -inf }
 0x1c4   :  { %477 = vmax.xlane.f32.xlu2 %v476_v38 }
 0x1c5   :  { %450 = vrot.lane.b32.xlu1 %v1067_v18, %s961_s2 }
 0x1c8   :  { %894 = vrot.lane.b32.xlu0 %v893_v39, %s963_s25 }
 0x1dc   :  { %368 = vrot.lane.b32.xlu2 %v1063_v16, %s964_s26 }
 0x21f   :  { %v322_v40 = vpop.xlane.xlu1 %321  ;;  %v166_v41 = vpop.xlane.xlu2 %165 }
 0x220   :  { %v326_v42 = vsub.f32 %v289_v29, %v322_v40  ;;  %v170_v43 = vsub.f32 %v133_v30, %v166_v41 }
 0x222   :  { %v328_v44 = vmul.f32 1.442695, %v326_v42  ;;  %v172_v45 = vmul.f32 1.442695, %v170_v43 }
 0x224   :  { %900 = vpow2.f32 %v328_v44 }
 0x225   :  { %902 = vpow2.f32 %v172_v45 }
 0x227   :  { %v169_v46 = vpop.xlane.xlu0 %168 }
 0x228   :  { %v171_v47 = vsub.f32 %v161_v33, %v169_v46 }
 0x22a   :  { %v1106_v48 = vpop.eup %900  ;;  %v174_v49 = vmul.f32 1.442695, %v171_v47 }
 0x22b   :  { %v1108_v50 = vpop.eup %902  ;;  %v332_v51 = vsel %vm110_vm1, %v1106_v48, 0.0 }
 0x22c   :  { %904 = vpow2.f32 %v174_v49  ;;  %333 = vadd.xlane.f32.xlu2 %v332_v51  ;;  %v176_v52 = vsel %vm110_vm1, %v1108_v50, 0.0 }
 0x22d   :  { %177 = vadd.xlane.f32.xlu0 %v176_v52 }
 0x22f   :  { %v325_v53 = vpop.xlane.xlu2 %324 }
 0x230   :  { %v327_v54 = vsub.f32 %v317_v35, %v325_v53 }
 0x232   :  { %v1114_v55 = vpop.eup %904  ;;  %v330_v56 = vmul.f32 1.442695, %v327_v54 }
 0x233   :  { %v179_v57 = vsel %vm110_vm1, %v1114_v55, 0.0 }
 0x234   :  { %906 = vpow2.f32 %v330_v56  ;;  %180 = vadd.xlane.f32.xlu1 %v179_v57 }
 0x237   :  { %v478_v58 = vpop.xlane.xlu2 %477  ;;  %v1136_v5 = vpop.permute.xlu1 %450 }
 0x238   :  { %v482_v59 = vsub.f32 %v445_v37, %v478_v58 }
 0x23a   :  { %v1118_v60 = vpop.eup %906  ;;  %v484_v61 = vmul.f32 1.442695, %v482_v59  ;;  %v895_v62 = vpop.permute.xlu0 %894 }
 0x23b   :  { %v335_v63 = vsel %vm110_vm1, %v1118_v60, 0.0  ;;  %v896_v0 = vunpack.i.l.bf16 %v895_v62  ;;  %v897_v1 = vunpack.i.h.bf16 %v895_v62 }
 0x23c   :  { %908 = vpow2.f32 %v484_v61  ;;  %336 = vadd.xlane.f32.xlu1 %v335_v63 }
 0x23d   :  { %233 = vmatpush.msra.mxu3 %v896_v0 }
 0x23f   :  { %259 = vmatpush.msrb.mxu3 %v897_v1  ;;  %v369_v4 = vpop.permute.xlu2 %368 }
 0x241   :  { %448 = vrot.lane.b32.xlu0 %v1076_v20, %s962_s24 }
 0x242   :  { %v1124_v2 = vpop.eup %908 }
 0x243   :  { %v488_v3 = vsel %vm110_vm1, %v1124_v2, 0.0 }
 0x244   :  { %578 = vrot.lane.b32.xlu2 %v1063_v16, %s965_s27  ;;  %489 = vadd.xlane.f32.xlu1 %v488_v3 }
 0x249   :  { %394 = vrot.lane.b32.xlu0 %v1067_v18, %s964_s26 }
 0x24c   :  { %524 = vrot.lane.b32.xlu2 %v1063_v16, %s966_s28 }
 0x251   :  { %576 = vrot.lane.b32.xlu0 %v1070_v19, %s967_s29 }
 0x259   :  { %604 = vrot.lane.b32.xlu0 %v1076_v20, %s967_s29 }
 0x25d   :  { %606 = vrot.lane.b32.xlu1 %v1067_v18, %s965_s27 }
 0x29f   :  { %v1138_v7 = vpop.xlane.xlu2 %333 }
 0x2a0   :  { %v178_v6 = vpop.xlane.xlu0 %177  ;;  %vm343_vm11 = vweird.f32 %v1138_v7  ;;  %v349_v44 = vand.u32 2147483648, %v1138_v7  ;;  %v347_v47 = vand.u32 2147483647, %v1138_v7 }
 0x2a1   :  { %910 = vrcp.f32 %v178_v6  ;;  %v193_v14 = vand.u32 2147483648, %v178_v6  ;;  %v191_v17 = vand.u32 2147483647, %v178_v6  ;;  %vm187_vm3 = vweird.f32 %v178_v6 }
 0x2a2   :  { %912 = vrcp.f32 %v1138_v7  ;;  %v350_v57 = vor.u32 1.1754944e-38, %v349_v44 }
 0x2a3   :  { %v194_v23 = vor.u32 1.1754944e-38, %v193_v14  ;;  %vm192_vm5 = vcmp.eq.f32.partialorder %v191_v17, 8.507059e+37 }
 0x2a7   :  { %v911_v8 = vpop.eup %910  ;;  %v181_v9 = vpop.xlane.xlu1 %180 }
 0x2a8   :  { %v183_v10 = vmul.f32 %v911_v8, %v178_v6  ;;  %914 = vrcp.f32 %v181_v9  ;;  %v1141_v11 = vpop.eup %912  ;;  %vm188_vm2 = vweird.f32 %v911_v8  ;;  %v1145_v27 = vpop.permute.xlu2 %578  ;;  %v208_v30 = vand.u32 2147483648, %v181_v9 }
 0x2a9   :  { %v339_v15 = vmul.f32 %v1141_v11, %v1138_v7  ;;  %vm189_vm4 = vmor %vm187_vm3, %vm188_vm2  ;;  %v206_v33 = vand.u32 2147483647, %v181_v9  ;;  %vm202_vm7 = vweird.f32 %v181_v9  ;;  %vm344_vm10 = vweird.f32 %v1141_v11 }
 0x2aa   :  { %v184_v12 = vsub.f32 1.0, %v183_v10  ;;  %v209_v37 = vor.u32 1.1754944e-38, %v208_v30  ;;  %vm1158_vm13 = vmor %vm343_vm11, %vm344_vm10  ;;  %vm348_vm2 = vcmp.eq.f32.partialorder %v347_v47, 8.507059e+37 }
 0x2ab   :  { %v340_v24 = vsub.f32 1.0, %v339_v15  ;;  %vm207_vm9 = vcmp.eq.f32.partialorder %v206_v33, 8.507059e+37 }
 0x2ac   :  { %v185_v13 = vmul.f32 %v911_v8, %v184_v12 }
 0x2ad   :  { %v341_v34 = vmul.f32 %v1141_v11, %v340_v24 }
 0x2ae   :  { %v915_v19 = vpop.eup %914  ;;  %v186_v20 = vadd.f32 %v911_v8, %v185_v13 }
 0x2af   :  { %v198_v21 = vmul.f32 %v915_v19, %v181_v9  ;;  %v337_v22 = vpop.xlane.xlu1 %336  ;;  %vm203_vm6 = vweird.f32 %v915_v19  ;;  %v342_v41 = vadd.f32 %v1141_v11, %v341_v34 }
 0x2b0   :  { %916 = vrcp.f32 %v337_v22  ;;  %v190_v26 = vsel %vm189_vm4, %v911_v8, %v186_v20  ;;  %vm204_vm8 = vmor %vm202_vm7, %vm203_vm6  ;;  %v364_v45 = vand.u32 2147483648, %v337_v22  ;;  %v525_v53 = vpop.permute.xlu2 %524  ;;  %vm358_vm14 = vweird.f32 %v337_v22 }
 0x2b1   :  { %v199_v25 = vsub.f32 1.0, %v198_v21  ;;  %v195_v28 = vsel %vm192_vm5, %v194_v23, %v190_v26  ;;  %v346_v54 = vsel %vm1158_vm13, %v1141_v11, %v342_v41 }
 0x2b2   :  { %v196_v32 = vmul.f32 %v1108_v50, %v195_v28  ;;  %v362_v50 = vand.u32 2147483647, %v337_v22  ;;  %v365_v58 = vor.u32 1.1754944e-38, %v364_v45  ;;  %v351_v62 = vsel %vm348_vm2, %v350_v57, %v346_v54 }
 0x2b3   :  { %v200_v29 = vmul.f32 %v915_v19, %v199_v25  ;;  %v1147_v31 = vpop.permute.xlu0 %448  ;;  %v352_v7 = vmul.f32 %v1106_v48, %v351_v62 }
 0x2b4   :  { %851 = vmatmul.msk.f32.vlgmr.msra.gmra.mxu3 %vm110_vm1, %v196_v32  ;;  %vm363_vm3 = vcmp.eq.f32.partialorder %v362_v50, 8.507059e+37 }
 0x2b5   :  { %v201_v35 = vadd.f32 %v915_v19, %v200_v29  ;;  %389 = vmatpush.msra.mxu3 %v369_v4 }
 0x2b6   :  { %v917_v36 = vpop.eup %916 }
 0x2b7   :  { %v354_v38 = vmul.f32 %v917_v36, %v337_v22  ;;  %v490_v39 = vpop.xlane.xlu1 %489  ;;  %v205_v40 = vsel %vm204_vm8, %v915_v19, %v201_v35  ;;  %vm359_vm12 = vweird.f32 %v917_v36 }
 0x2b8   :  { %918 = vrcp.f32 %v490_v39  ;;  %v210_v43 = vsel %vm207_vm9, %v209_v37, %v205_v40  ;;  %vm360_vm15 = vmor %vm358_vm14, %vm359_vm12  ;;  %v505_v3 = vand.u32 2147483648, %v490_v39  ;;  %v503_v6 = vand.u32 2147483647, %v490_v39 }
 0x2b9   :  { %v355_v42 = vsub.f32 1.0, %v354_v38  ;;  %v211_v46 = vmul.f32 %v1114_v55, %v210_v43  ;;  %vm499_vm5 = vweird.f32 %v490_v39 }
 0x2ba   :  { %vm504_vm7 = vcmp.eq.f32.partialorder %v503_v6, 8.507059e+37 }
 0x2bb   :  { %v356_v49 = vmul.f32 %v917_v36, %v355_v42  ;;  %v395_v51 = vpop.permute.xlu0 %394 }
 0x2bc   :  { %415 = vmatpush.msrb.mxu1 %v395_v51  ;;  %852 = vmatmul.msk.f32.vlgmr.msrb.gmra.mxu3 %vm110_vm1, %v211_v46 }
 0x2bd   :  { %v357_v56 = vadd.f32 %v917_v36, %v356_v49  ;;  %861 = vmatpush.xpose.msk.msrb.mxu3 %vm110_vm1, %v1136_v5  ;;  %v506_v5 = vor.u32 1.1754944e-38, %v505_v3 }
 0x2be   :  { %545 = vmatpush.msra.mxu1 %v525_v53  ;;  %v919_v55 = vpop.eup %918 }
 0x2bf   :  { %v495_v59 = vmul.f32 %v919_v55, %v490_v39  ;;  %v361_v61 = vsel %vm360_vm15, %v917_v36, %v357_v56  ;;  %vm500_vm4 = vweird.f32 %v919_v55 }
 0x2c0   :  { %v366_v63 = vsel %vm363_vm3, %v365_v58, %v361_v61  ;;  %vm501_vm6 = vmor %vm499_vm5, %vm500_vm4 }
 0x2c1   :  { %v496_v0 = vsub.f32 1.0, %v495_v59  ;;  %v367_v1 = vmul.f32 %v1118_v60, %v366_v63 }
 0x2c3   :  { %v497_v4 = vmul.f32 %v919_v55, %v496_v0  ;;  %858 = vmatmul.msk.f32.vlgmr.msrb.gmra.mxu1 %vm110_vm1, %v367_v1  ;;  %v577_v10 = vpop.permute.xlu0 %576 }
 0x2c4   :  { %857 = vmatmul.msk.f32.vlgmr.msra.gmra.mxu3 %vm110_vm1, %v352_v7 }
 0x2c5   :  { %v498_v8 = vadd.f32 %v919_v55, %v497_v4  ;;  %865 = vmatpush.xpose.msk.msra.mxu3 %vm110_vm1, %v1145_v27 }
 0x2c7   :  { %v502_v9 = vsel %vm501_vm6, %v919_v55, %v498_v8  ;;  %vm758_vm6 = vcmask 130048  }
 0x2c8   :  { %v507_v60 = vsel %vm504_vm7, %v506_v5, %v502_v9  ;;  %vm761_vm7 = vcmask 195584  }
 0x2c9   :  { %v508_v11 = vmul.f32 %v1124_v2, %v507_v60 }
 0x2cb   :  { %863 = vmatmul.msk.f32.vlgmr.msra.gmra.mxu1 %vm110_vm1, %v508_v11  ;;  %v605_v12 = vpop.permute.xlu0 %604 }
 0x2cc   :  { %862 = vmatmul.msk.f32.vlgmr.msrb.gmra.mxu3 %vm110_vm1, %v1147_v31 }
 0x2cf   :  { %v607_v48 = vpop.permute.xlu1 %606 }
 0x2d0   :  { %867 = vmatpush.xpose.msk.msrb.mxu1 %vm110_vm1, %v607_v48 }
 0x2d3   :  { %868 = vmatmul.msk.f32.vlgmr.msrb.gmra.mxu1 %vm110_vm1, %v605_v12 }
 0x2d4   :  { %866 = vmatmul.msk.f32.vlgmr.msra.gmra.mxu3 %vm110_vm1, %v577_v10 }
 0x337   :  { %v1181_v13 = vpop.f32.mrf.mxu3 }
 0x33f   :  { %v1183_v14 = vpop.f32.mrf.mxu3 }
 0x340   :  { %v417_v15 = vpop.f32.mrf.mxu1 }
 0x347   :  { %v391_v17 = vpop.f32.mrf.mxu3 }
 0x348   :  { %v547_v2 = vpop.f32.mrf.mxu1 }
 0x34f   :  { %v473_v19 = vpop.f32.mrf.mxu3 }
 0x350   :  { %v629_v20 = vpop.f32.mrf.mxu1  ;;  %v479_v21 = vsel %vm110_vm1, %v473_v19, -inf }
 0x351   :  { %v635_v22 = vsel %vm110_vm1, %v629_v20, -inf  ;;  %480 = vmax.xlane.f32.xlu2 %v479_v21  ;;  %v766_v21 = vld [vmem:[%s1240_s3 + $0x10] sm:$0xff] }
 0x352   :  { %636 = vmax.xlane.f32.xlu0 %v635_v22  ;;  %v765_v22 = vld [vmem:[%s1240_s3 + $0x8] sm:$0xff] }
 0x357   :  { %v601_v23 = vpop.f32.mrf.mxu3 }
 0x358   :  { %v632_v24 = vsel %vm110_vm1, %v601_v23, -inf }
 0x359   :  { %633 = vmax.xlane.f32.xlu1 %v632_v24 }
 0x3c4   :  { %v481_v25 = vpop.xlane.xlu2 %480 }
 0x3c5   :  { %v637_v26 = vpop.xlane.xlu0 %636  ;;  %v483_v27 = vsub.f32 %v473_v19, %v481_v25 }
 0x3c6   :  { %v639_v28 = vsub.f32 %v629_v20, %v637_v26  ;;  %v767_v20 = vld [vmem:[%s1240_s3 + $0x18] sm:$0xff] }
 0x3c7   :  { %v486_v29 = vmul.f32 1.442695, %v483_v27  ;;  %871 = vmatpush.xpose.msk.msra.mxu1 %vm39_vm0, %v767_v20 }
 0x3c8   :  { %v642_v30 = vmul.f32 1.442695, %v639_v28 }
 0x3c9   :  { %920 = vpow2.f32 %v486_v29 }
 0x3ca   :  { %922 = vpow2.f32 %v642_v30 }
 0x3cb   :  { %872 = vmatpush.xpose.msk.msra.mxu1 %vm39_vm0, %v766_v21 }
 0x3cc   :  { %v634_v31 = vpop.xlane.xlu1 %633 }
 0x3cd   :  { %v638_v32 = vsub.f32 %v601_v23, %v634_v31  ;;  %v764_v23 = vld [vmem:[%s1240_s3] sm:$0xff] }
 0x3cf   :  { %v921_v33 = vpop.eup %920  ;;  %v640_v34 = vmul.f32 1.442695, %v638_v32  ;;  %873 = vmatpush.xpose.msk.msra.mxu1 %vm39_vm0, %v765_v22 }
 0x3d0   :  { %v923_v35 = vpop.eup %922  ;;  %v491_v36 = vsel %vm110_vm1, %v921_v33, 0.0 }
 0x3d1   :  { %924 = vpow2.f32 %v640_v34  ;;  %492 = vadd.xlane.f32.xlu2 %v491_v36  ;;  %v647_v37 = vsel %vm110_vm1, %v923_v35, 0.0  ;;  %v899_v36 = vld [vmem:[%s1241_s4] ss:$0 sm:$0xff] }
 0x3d2   :  { %648 = vadd.xlane.f32.xlu0 %v647_v37 }
 0x3d3   :  { %874 = vmatpush.xpose.msk.msra.mxu1 %vm39_vm0, %v764_v23 }
 0x3d7   :  { %v1190_v38 = vpop.eup %924 }
 0x3d8   :  { %v644_v39 = vsel %vm110_vm1, %v1190_v38, 0.0 }
 0x3d9   :  { %645 = vadd.xlane.f32.xlu1 %v644_v39 }
 0x3e6   :  { %706 = vrot.lane.b32.xlu0 %v1067_v18, %s968_s30 }
 0x3e9   :  { %550 = vrot.lane.b32.xlu2 %v1067_v18, %s966_s28 }
 0x3ee   :  { %742 = vrot.lane.b32.xlu0 %v547_v2, %s969_s6 }
 0x3f1   :  { %734 = vrot.lane.b32.xlu2 %v391_v17, %s970_s7 }
 0x3f2   :  { %680 = vrot.lane.b32.xlu1 %v1063_v16, %s968_s30 }
 0x3f9   :  { %736 = vrot.lane.b32.xlu2 %v417_v15, %s970_s7 }
 0x444   :  { %v493_v40 = vpop.xlane.xlu2 %492 }
 0x445   :  { %926 = vrcp.f32 %v493_v40  ;;  %v649_v41 = vpop.xlane.xlu0 %648  ;;  %v520_v49 = vand.u32 2147483648, %v493_v40  ;;  %v518_v16 = vand.u32 2147483647, %v493_v40  ;;  %vm514_vm10 = vweird.f32 %v493_v40 }
 0x446   :  { %928 = vrcp.f32 %v649_v41  ;;  %v676_v52 = vand.u32 2147483648, %v649_v41  ;;  %v674_v54 = vand.u32 2147483647, %v649_v41  ;;  %vm670_vm12 = vweird.f32 %v649_v41 }
 0x447   :  { %v521_v57 = vor.u32 1.1754944e-38, %v520_v49  ;;  %vm519_vm13 = vcmp.eq.f32.partialorder %v518_v16, 8.507059e+37 }
 0x448   :  { %v677_v61 = vor.u32 1.1754944e-38, %v676_v52  ;;  %vm675_vm15 = vcmp.eq.f32.partialorder %v674_v54, 8.507059e+37 }
 0x44b   :  { %v927_v42 = vpop.eup %926 }
 0x44c   :  { %v929_v43 = vpop.eup %928  ;;  %v510_v44 = vmul.f32 %v927_v42, %v493_v40  ;;  %v646_v45 = vpop.xlane.xlu1 %645  ;;  %vm515_vm8 = vweird.f32 %v927_v42 }
 0x44d   :  { %v551_v46 = vpop.permute.xlu2 %550  ;;  %v666_v18 = vmul.f32 %v929_v43, %v649_v41  ;;  %930 = vrcp.f32 %v646_v45  ;;  %vm671_vm9 = vweird.f32 %v929_v43  ;;  %vm516_vm11 = vmor %vm514_vm10, %vm515_vm8  ;;  %v661_v9 = vand.u32 2147483648, %v646_v45 }
 0x44e   :  { %571 = vmatpush.msra.mxu2 %v551_v46  ;;  %v511_v47 = vsub.f32 1.0, %v510_v44  ;;  %vm672_vm14 = vmor %vm670_vm12, %vm671_vm9  ;;  %vm655_vm3 = vweird.f32 %v646_v45  ;;  %v659_v60 = vand.u32 2147483647, %v646_v45 }
 0x44f   :  { %v667_v50 = vsub.f32 1.0, %v666_v18  ;;  %v662_v11 = vor.u32 1.1754944e-38, %v661_v9 }
 0x450   :  { %v512_v51 = vmul.f32 %v927_v42, %v511_v47  ;;  %vm660_vm5 = vcmp.eq.f32.partialorder %v659_v60, 8.507059e+37 }
 0x451   :  { %v668_v53 = vmul.f32 %v929_v43, %v667_v50 }
 0x452   :  { %v513_v56 = vadd.f32 %v927_v42, %v512_v51 }
 0x453   :  { %v931_v55 = vpop.eup %930  ;;  %v669_v58 = vadd.f32 %v929_v43, %v668_v53 }
 0x454   :  { %v517_v59 = vsel %vm516_vm11, %v927_v42, %v513_v56  ;;  %v651_v62 = vmul.f32 %v931_v55, %v646_v45  ;;  %vm656_vm2 = vweird.f32 %v931_v55 }
 0x455   :  { %v522_v63 = vsel %vm519_vm13, %v521_v57, %v517_v59  ;;  %v673_v0 = vsel %vm672_vm14, %v929_v43, %v669_v58  ;;  %vm657_vm4 = vmor %vm655_vm3, %vm656_vm2  ;;  %v735_v24 = vpop.permute.xlu2 %734 }
 0x456   :  { %v678_v1 = vsel %vm675_vm15, %v677_v61, %v673_v0  ;;  %v652_v3 = vsub.f32 1.0, %v651_v62  ;;  %v523_v4 = vmul.f32 %v921_v33, %v522_v63  ;;  %v756_v26 = vsel %vm110_vm1, %v1181_v13, %v735_v24 }
 0x457   :  { %v679_v6 = vmul.f32 %v923_v35, %v678_v1 }
 0x458   :  { %v653_v7 = vmul.f32 %v931_v55, %v652_v3  ;;  %864 = vmatmul.msk.f32.vlgmr.msra.gmra.mxu2 %vm110_vm1, %v523_v4  ;;  %v707_v8 = vpop.permute.xlu0 %706 }
 0x459   :  { %727 = vmatpush.msrb.mxu3 %v707_v8 }
 0x45a   :  { %v654_v5 = vadd.f32 %v931_v55, %v653_v7  ;;  %870 = vmatmul.msk.f32.vlgmr.msrb.gmra.mxu3 %vm110_vm1, %v679_v6 }
 0x45c   :  { %v658_v10 = vsel %vm657_vm4, %v931_v55, %v654_v5 }
 0x45d   :  { %v663_v48 = vsel %vm660_vm5, %v662_v11, %v658_v10  ;;  %v737_v30 = vpop.permute.xlu2 %736 }
 0x45e   :  { %v664_v15 = vmul.f32 %v1190_v38, %v663_v48  ;;  %v757_v32 = vsel %vm110_vm1, %v1183_v14, %v737_v30 }
 0x460   :  { %v743_v25 = vpop.permute.xlu0 %742 }
 0x461   :  { %v759_v27 = vsel %vm758_vm6, %v756_v26, %v743_v25 }
 0x464   :  { %v681_v12 = vpop.permute.xlu1 %680 }
 0x465   :  { %701 = vmatpush.msrb.mxu2 %v681_v12 }
 0x466   :  { %869 = vmatmul.msk.f32.vlgmr.msrb.gmra.mxu2 %vm110_vm1, %v664_v15 }
 0x4db   :  { %v573_v17 = vpop.f32.mrf.mxu2 }
 0x4dc   :  { %744 = vrot.lane.b32.xlu0 %v573_v17, %s969_s6 }
 0x4dd   :  { %v729_v19 = vpop.f32.mrf.mxu3 }
 0x4e9   :  { %v703_v2 = vpop.f32.mrf.mxu2 }
 0x4ea   :  { %750 = vrot.lane.b32.xlu1 %v703_v2, %s971_s8 }
 0x4f2   :  { %752 = vrot.lane.b32.xlu1 %v729_v19, %s971_s8 }
 0x54e   :  { %v745_v31 = vpop.permute.xlu0 %744 }
 0x54f   :  { %v760_v33 = vsel %vm758_vm6, %v757_v32, %v745_v31 }
 0x55c   :  { %v751_v28 = vpop.permute.xlu1 %750 }
 0x55d   :  { %v762_v29 = vsel %vm761_vm7, %v759_v27, %v751_v28 }
 0x55e   :  { %875 = vmatmul.msk.f32.vlgmr.msra.gmra.mxu1 %vm39_vm0, %v762_v29 }
 0x564   :  { %v753_v34 = vpop.permute.xlu1 %752 }
 0x565   :  { %v763_v35 = vsel %vm761_vm7, %v760_v33, %v753_v34 }
 0x566   :  { %876 = vmatmul.msk.f32.gmra.mxu1 %vm39_vm0, %v763_v35 }
 0x5db   :  { %v807_v13 = vpop.f32.mrf.mxu1 }
 0x5dc   :  { %v808_v37 = vadd.f32 %v899_v36, %v807_v13 }
 0x5de   :  { %813 = vst.msk [vmem:[#allocation2] sm:$0xff] %vm39_vm0, %v808_v37 }
 0x5e3   :  { %v810_v14 = vpop.f32.mrf.mxu1 }
 0x5e4   :  { %v811_v38 = vadd.f32 %v899_v36, %v810_v14 }
 0x5e6   :  { %814 = vst.msk [vmem:[#allocation2 + $0x8] sm:$0xff] %vm39_vm0, %v811_v38 }
 0x5e7   :  { %827 = dma.vmem_to_hbm [thread:$0]  %s820_s19, 256, %s822_s22, [#allocation3], %s973_s1, %s973_s1, %s970_s7  }
 0x5e8   :  { %956 = dma.done.wait [#allocation3], 256  }
 0x5e9   :  { %957 = vsyncadd [#allocation3], 4294967040 }
 0x5ea   :  { %832 = vsyncpa [#allocation3], 1 }

</bundles_post_ra>
